<compile_context>
chip_gen: v7x
topology: tpu7x:2x2x1
jax: 0.10.0
libtpu: 0.0.40
codegen_flags: <defaults>
</compile_context>

<pallas_src>
import jax
import jax.numpy as jnp
from jax.experimental import pallas as pl
from jax.experimental.pallas import tpu as pltpu

FEATURE_SHAPE = 1024   # resnet variant
HIDDEN = 512
OUT = 1


def _round_up(n, m):
    return ((n + m - 1) // m) * m


def _choose_tiles(B, tb):
    """Pick (batch_tile, num_tiles) with small pad slack and >=2 tiles for v7x."""
    B8 = _round_up(B, 8)                 # sublane alignment
    n = pl.cdiv(B8, tb)
    if B8 >= 16:
        n = max(n, 2)                    # give both v7x TensorCores a tile
        if n % 2:
            n += 1                       # even tile count balances the 2-TC split
    TB = _round_up(pl.cdiv(B8, n), 8)    # TB <= tb, multiple of 8
    n = pl.cdiv(B8, TB)                  # TB rounding may need fewer tiles
    return TB, n


def purity_kernel(x_ref, w1_ref, b1_ref, w2_ref, b2_ref, o_ref):
    # fc8: cast x to bf16 in-kernel (VPU has slack; avoids a separate HBM
    # cast pass in the wrapper), matmul on the MXU with f32 accumulation.
    x = x_ref[...].astype(jnp.bfloat16)
    h = jnp.dot(x, w1_ref[...], preferred_element_type=jnp.float32)
    h = jnp.maximum(h + b1_ref[...], 0.0)                  # relu8, (TB, 512) f32
    # TODO(synk): nn.Dropout (drop8) is identity in eval mode; training-mode
    # dropout (random masking + 1/(1-p) scaling) is intentionally not implemented.
    # fc9: N=1 matmul wastes the MXU -> VPU multiply + lane reduction instead.
    y = jnp.sum(h * w2_ref[...], axis=-1, keepdims=True)   # (TB, 1) f32
    o_ref[...] = (y + b2_ref[0]).astype(o_ref.dtype)


def purity_forward(x, w1, b1, w2, b2, *, tb=1024):
    """x: (B, 1024) float (f32 or bf16) -> (B, 1) float32.

    w1: (1024, 512) bf16, b1: (1, 512) f32, w2: (1, 512) f32, b2: (1,) f32.
    """
    B = x.shape[0]
    TB, n_tiles = _choose_tiles(B, tb)
    B_pad = TB * n_tiles

    if B_pad != B:
        # Only the small ragged tail is padded; the bf16 cast is fused into
        # the kernel so there is no other full-x HBM pre-pass.
        x = jnp.pad(x, ((0, B_pad - B), (0, 0)))

    x_itemsize = jnp.dtype(x.dtype).itemsize

    # Advisory cost hint for XLA's scheduler.
    bytes_accessed = (
        B_pad * FEATURE_SHAPE * x_itemsize   # x (streamed)
        + FEATURE_SHAPE * HIDDEN * 2         # W1 (bf16)
        + 2 * HIDDEN * 4                     # b1 + w2 (f32)
        + 4                                  # b2
        + B_pad * OUT * 4                    # output (f32)
    )
    cost = pl.CostEstimate(
        flops=2 * B_pad * FEATURE_SHAPE * HIDDEN + 2 * B_pad * HIDDEN,
        transcendentals=0,
        bytes_accessed=bytes_accessed,
    )

    # VMEM footprint (double-buffered streamed operands + resident weights +
    # in-kernel temporaries), with 2x headroom for compiler scratch; clamp to
    # [16 MiB, 64 MiB] so it is valid on v7x's 64 MiB physical VMEM.
    footprint = (
        2 * TB * FEATURE_SHAPE * x_itemsize   # x tile, double-buffered
        + 2 * FEATURE_SHAPE * HIDDEN * 2      # W1 (bf16), double-buffered
        + 2 * 2 * 8 * HIDDEN * 4              # b1 / w2 rows (sublane-padded)
        + 2 * TB * 128 * 4                    # output tile (lane-padded)
        + TB * FEATURE_SHAPE * 2              # in-kernel bf16 copy of x
        + TB * HIDDEN * 4                     # fc8 activation h
    )
    vmem_limit = max(16 * 2**20, min(64 * 2**20, _round_up(2 * footprint, 2**20)))

    out = pl.pallas_call(
        purity_kernel,
        out_shape=jax.ShapeDtypeStruct((B_pad, OUT), jnp.float32),
        grid=(n_tiles,),
        in_specs=[
            # x: streamed per batch tile (double-buffered by the pipeline).
            pl.BlockSpec((TB, FEATURE_SHAPE), lambda i: (i, 0)),
            # Weights / biases: constant index_map => VMEM-resident, no re-DMA.
            pl.BlockSpec((FEATURE_SHAPE, HIDDEN), lambda i: (0, 0)),
            pl.BlockSpec((1, HIDDEN), lambda i: (0, 0)),
            pl.BlockSpec((1, HIDDEN), lambda i: (0, 0)),
            # b2: tiny scalar, keep it in SMEM (no padded VMEM tile).
            pl.BlockSpec(memory_space=pltpu.MemorySpace.SMEM),
        ],
        out_specs=pl.BlockSpec((TB, OUT), lambda i: (i, 0)),
        compiler_params=pltpu.CompilerParams(
            dimension_semantics=("parallel",),   # megacore sharding on v7x
            vmem_limit_bytes=vmem_limit,
        ),
        cost_estimate=cost,
    )(x, w1, b1, w2, b2)

    return out[:B]


def init_params(key):
    """PyTorch Linear default init (U[-1/sqrt(fan_in), +1/sqrt(fan_in)]).

    W1 is stored transposed, (in, out), in bf16; w2 is stored as a (1, 512)
    row for the VPU reduction; biases stay f32."""
    k1, k2, k3, k4 = jax.random.split(key, 4)
    lim1 = 1.0 / jnp.sqrt(FEATURE_SHAPE)
    lim2 = 1.0 / jnp.sqrt(HIDDEN)
    w1 = jax.random.uniform(k1, (FEATURE_SHAPE, HIDDEN), jnp.float32, -lim1, lim1)
    b1 = jax.random.uniform(k2, (1, HIDDEN), jnp.float32, -lim1, lim1)
    w2 = jax.random.uniform(k3, (1, HIDDEN), jnp.float32, -lim2, lim2)
    b2 = jax.random.uniform(k4, (1,), jnp.float32, -lim2, lim2)
    return w1.astype(jnp.bfloat16), b1, w2, b2


def reference_forward(x, w1, b1, w2, b2):
    # Same bf16-quantized x/W1 as the kernel, f32 math, for a tight check.
    xf = x.astype(jnp.bfloat16).astype(jnp.float32)
    w1f = w1.astype(jnp.float32)
    h = jnp.maximum(xf @ w1f + b1, 0.0)
    return jnp.sum(h * w2, axis=-1, keepdims=True) + b2[0]


if __name__ == "__main__":
    key = jax.random.PRNGKey(0)
    kx, kp = jax.random.split(key)
    w1, b1, w2, b2 = init_params(kp)

    # Inputs to Purity are already-pooled backbone features; the module just
    # flattens, so x is built directly at (B, FEATURE_SHAPE).  B=8 hits the
    # single-tile path; B=20 exercises the adaptive 2-tile + ragged-pad path.
    for B in (8, 20):
        x = jax.random.normal(jax.random.fold_in(kx, B),
                              (B, FEATURE_SHAPE), jnp.float32)
        out = jax.block_until_ready(purity_forward(x, w1, b1, w2, b2))
        ref = reference_forward(x, w1, b1, w2, b2)
        assert out.shape == (B, OUT)
        assert jnp.allclose(out, ref, atol=5e-2, rtol=5e-2), \
            f"mismatch vs reference (B={B})"

    print("KERNEL_OK")
</pallas_src>

<mosaic_0001>
module attributes {stable_mosaic.version = 11 : i64} {
  func.func @purity_kernel(%arg0: i32, %arg1: memref<8x1024xf32, #tpu.memory_space<vmem>>, %arg2: memref<1024x512xbf16, #tpu.memory_space<vmem>>, %arg3: memref<1x512xf32, #tpu.memory_space<vmem>>, %arg4: memref<1x512xf32, #tpu.memory_space<vmem>>, %arg5: memref<1xf32, #tpu.memory_space<smem>>, %arg6: memref<8x1xf32, #tpu.memory_space<vmem>>) attributes {dimension_semantics = [#tpu.dimension_semantics<parallel>], iteration_bounds = array<i64: 1>, scalar_prefetch = 0 : i64, scratch_operands = 0 : i64, tpu.core_type = #tpu.core_type<tc>, window_params = [{transform_indices = @transform_0, window_bounds = array<i64: 8, 1024>}, {pipeline_mode = #tpu.pipeline_mode<synchronous>, transform_indices = @transform_1, window_bounds = array<i64: 1024, 512>}, {pipeline_mode = #tpu.pipeline_mode<synchronous>, transform_indices = @transform_2, window_bounds = array<i64: 1, 512>}, {pipeline_mode = #tpu.pipeline_mode<synchronous>, transform_indices = @transform_3, window_bounds = array<i64: 1, 512>}, {transform_indices = @transform_4, window_bounds = array<i64: 1>}, {transform_indices = @transform_5, window_bounds = array<i64: 8, 1>}]} {
    %c0 = arith.constant 0 : index
    %c0_0 = arith.constant 0 : index
    %0 = vector.load %arg1[%c0, %c0_0] : memref<8x1024xf32, #tpu.memory_space<vmem>>, vector<8x1024xf32>
    %1 = arith.truncf %0 : vector<8x1024xf32> to vector<8x1024xbf16>
    %c0_1 = arith.constant 0 : index
    %c0_2 = arith.constant 0 : index
    %2 = vector.load %arg2[%c0_1, %c0_2] : memref<1024x512xbf16, #tpu.memory_space<vmem>>, vector<1024x512xbf16>
    %cst = arith.constant dense<0.000000e+00> : vector<8x512xf32>
    %3 = tpu.matmul %1, %2, %cst {dimension_numbers = #tpu.dot_dimension_numbers<[1], [0], [0], [1], [0, 0, 1, 1], [], []>} : vector<8x1024xbf16>, vector<1024x512xbf16>, vector<8x512xf32> -> vector<8x512xf32>
    %c0_3 = arith.constant 0 : index
    %c0_4 = arith.constant 0 : index
    %4 = vector.load %arg3[%c0_3, %c0_4] : memref<1x512xf32, #tpu.memory_space<vmem>>, vector<1x512xf32>
    %5 = vector.broadcast %4 : vector<1x512xf32> to vector<8x512xf32>
    %6 = arith.addf %3, %5 : vector<8x512xf32>
    %cst_5 = arith.constant 0.000000e+00 : f32
    %7 = vector.broadcast %cst_5 : f32 to vector<8x512xf32>
    %8 = arith.maximumf %6, %7 : vector<8x512xf32>
    %c0_6 = arith.constant 0 : index
    %c0_7 = arith.constant 0 : index
    %9 = vector.load %arg4[%c0_6, %c0_7] : memref<1x512xf32, #tpu.memory_space<vmem>>, vector<1x512xf32>
    %10 = vector.broadcast %9 : vector<1x512xf32> to vector<8x512xf32>
    %11 = arith.mulf %8, %10 : vector<8x512xf32>
    %cst_8 = arith.constant dense<0.000000e+00> : vector<8xf32>
    %12 = vector.multi_reduction <add>, %11, %cst_8 [1] : vector<8x512xf32> to vector<8xf32>
    %13 = vector.shape_cast %12 : vector<8xf32> to vector<8x1xf32>
    %c0_9 = arith.constant 0 : index
    %14 = memref.load %arg5[%c0_9] : memref<1xf32, #tpu.memory_space<smem>>
    %15 = vector.broadcast %14 : f32 to vector<8x1xf32>
    %16 = arith.addf %13, %15 : vector<8x1xf32>
    %c0_10 = arith.constant 0 : index
    %c0_11 = arith.constant 0 : index
    %17 = vector.load %arg6[%c0_10, %c0_11] : memref<8x1xf32, #tpu.memory_space<vmem>>, vector<8x1xf32>
    tpu.vector_store %arg6[%c0_10, %c0_11], %16 {strides = array<i32>} : memref<8x1xf32, #tpu.memory_space<vmem>>, vector<8x1xf32>,
    return
  }
  func.func @transform_0(%arg0: i32) -> (i32, i32) {
    %c0_i32 = arith.constant 0 : i32
    %c0_i32_0 = arith.constant 0 : i32
    return %arg0, %c0_i32 : i32, i32
  }
  func.func @transform_1(%arg0: i32) -> (i32, i32) {
    %c0_i32 = arith.constant 0 : i32
    %c0_i32_0 = arith.constant 0 : i32
    %c0_i32_1 = arith.constant 0 : i32
    return %c0_i32, %c0_i32_0 : i32, i32
  }
  func.func @transform_2(%arg0: i32) -> (i32, i32) {
    %c0_i32 = arith.constant 0 : i32
    %c0_i32_0 = arith.constant 0 : i32
    %c0_i32_1 = arith.constant 0 : i32
    return %c0_i32, %c0_i32_0 : i32, i32
  }
  func.func @transform_3(%arg0: i32) -> (i32, i32) {
    %c0_i32 = arith.constant 0 : i32
    %c0_i32_0 = arith.constant 0 : i32
    %c0_i32_1 = arith.constant 0 : i32
    return %c0_i32, %c0_i32_0 : i32, i32
  }
  func.func @transform_4(%arg0: i32) -> i32 {
    %c0_i32 = arith.constant 0 : i32
    %c0_i32_0 = arith.constant 0 : i32
    return %c0_i32 : i32
  }
  func.func @transform_5(%arg0: i32) -> (i32, i32) {
    %c0_i32 = arith.constant 0 : i32
    %c0_i32_0 = arith.constant 0 : i32
    return %arg0, %c0_i32 : i32, i32
  }
}

</mosaic_0001>

<bundles_post_ra>
// kernel: tpu_custom_call.1
= control target key start
LH: loop header
LB: loop body
LE: loop exit
PB: predicated region body
PF: predicated region fallthrough
CT: control target
= control target key end

     0   :  { %11 = vsyncpa [#allocation4], 0  ;;  %s2792_s0 = inlined_call_operand.hbm [shape: f32[8,1024], index: 0, kind: input, shape index: {}]   ;;  %s2793_s1 = inlined_call_operand.hbm [shape: bf16[1024,512], index: 1, kind: input, shape index: {}]   ;;  %s2794_s2 = inlined_call_operand.vmem [shape: f32[1,512], index: 2, kind: input, shape index: {}]   ;;  %s2795_s3 = inlined_call_operand.vmem [shape: f32[1,512], index: 3, kind: input, shape index: {}]   ;;  %s2796_s4 = inlined_call_operand.<no memory space> [shape: f32[1], index: 4, kind: input, shape index: {}]   ;;  %s2797_s5 = inlined_call_operand.vmem [shape: f32[8,1], index: 5, kind: output, shape index: {}]  }
   0x1   :  { %12 = vsyncpa [#allocation6], 0  ;;  %s2715_s18 = smov [#allocation3]   ;;  %s2716_s20 = smov [#allocation5]  }
   0x2   :  { %s19_s19 = sshll.u32 %s2715_s18, 4  ;;  %s28_s21 = sshll.u32 %s2716_s20, 4  ;;  %s20_s19 = int_to_ptr.vmem [resolvable:$true] %s19_s19  ;;  %s2749_s21 = int_to_ptr.vmem [resolvable:$true] %s28_s21 }
   0x3   :  { %s2667_s24 = scalar_lea.hbm %s2792_s0, 1024 }
   0x4   :  { %p2668_p0 = scmp.ne.s32.totalorder %s2792_s0, %s2667_s24  ;;  %p2671_p1 = scmp.lt.u32.totalorder %s2667_s24, %s2792_s0 }
   0x6   :  { %p2673_p2 = pnand %p2671_p1, %p2668_p0 }
   0x8   :  { %2676 = shalt.err (!%p2673_p2)
}
   0x9   :  { %s2677_s29 = scalar_lea.vmem %s20_s19, 1024  ;;  %p2682_p4 = scmp.lt.s32.totalorder %s20_s19, %s20_s19 }
   0xa   :  { %p2678_p3 = scmp.ne.s32.totalorder %s20_s19, %s2677_s29  ;;  %p2683_p5 = scmp.lt.s32.totalorder %s2677_s29, %s2677_s29 }
   0xc   :  { %p2684_p6 = por %p2683_p5, %p2682_p4 }
   0xe   :  { %p2685_p7 = pnand %p2684_p6, %p2678_p3 }
  0x10   :  { %2688 = shalt.err (!%p2685_p7)
}
  0x11   :  { %22 = dma.hbm_to_vmem [thread:$0]  %s2792_s0, 1024, %s20_s19, [#allocation4]  }
  0x12   :  { %s2689_s9 = scalar_lea.hbm %s2793_s1, 32768 }
  0x13   :  { %p2690_p8 = scmp.ne.s32.totalorder %s2793_s1, %s2689_s9  ;;  %p2693_p9 = scmp.lt.u32.totalorder %s2689_s9, %s2793_s1 }
  0x15   :  { %p2695_p10 = pnand %p2693_p9, %p2690_p8 }
  0x17   :  { %2698 = shalt.err (!%p2695_p10)
}
  0x18   :  { %s2699_s14 = scalar_lea.vmem %s2749_s21, 32768  ;;  %p2704_p12 = scmp.lt.s32.totalorder %s2749_s21, %s2749_s21 }
  0x19   :  { %p2700_p11 = scmp.ne.s32.totalorder %s2749_s21, %s2699_s14  ;;  %p2705_p13 = scmp.lt.s32.totalorder %s2699_s14, %s2699_s14 }
  0x1b   :  { %p2706_p0 = por %p2705_p13, %p2704_p12 }
  0x1d   :  { %p2707_p1 = pnand %p2706_p0, %p2700_p11 }
  0x1f   :  { %2710 = shalt.err (!%p2707_p1)
}
  0x20   :  { %s2717_s0 = smov 256   ;;  %s2718_s15 = smov 16  }
  0x21   :  { %34 = dma.hbm_to_vmem [thread:$0]  %s2793_s1, 32768, %s2749_s21, [#allocation6], %s2717_s0, %s2717_s0, %s2718_s15  }
  0x22   :  { %2711 = dma.done.wait [#allocation4], 1024  }
  0x23   :  { %2712 = vsyncadd [#allocation4], 4294966272 }
  0x24   :  { %2713 = dma.done.wait [#allocation6], 32768  }
  0x25   :  { %2714 = vsyncadd [#allocation6], 4294934528  ;;  %v2283_v0 = vld [vmem:[#allocation5 + $0x4] ss:$16 sps:$4 sm:$0xff]   ;;  %v2285_v1 = vld [vmem:[#allocation5 + $0xc] ss:$16 sps:$4 sm:$0xff]  }
  0x26   :  { %1621 = vmatprep.subr.bf16.mxu0 %v2283_v0  ;;  %v2287_v2 = vld [vmem:[#allocation5] ss:$16 sps:$4 sm:$0xff]   ;;  %v2288_v3 = vld [vmem:[#allocation5 + $0x8] ss:$16 sps:$4 sm:$0xff]   ;;  %1785 = vmatprep.subr.bf16.mxu1 %v2285_v1  ;;  %v2289_v4 = vld [vmem:[#allocation5 + $0x24] ss:$16 sps:$4 sm:$0xff]  }
  0x27   :  { %1622 = vmatpush1.bf16.msra.mxu0 %v2287_v2  ;;  %1786 = vmatpush1.bf16.msra.mxu1 %v2288_v3  ;;  %v2291_v5 = vld [vmem:[#allocation5 + $0x2c] ss:$16 sps:$4 sm:$0xff]   ;;  %v2293_v6 = vld [vmem:[#allocation5 + $0x20] ss:$16 sps:$4 sm:$0xff]   ;;  %v2294_v7 = vld [vmem:[#allocation5 + $0x28] ss:$16 sps:$4 sm:$0xff]  }
  0x28   :  { %1623 = vmatprep.subr.bf16.mxu0 %v2289_v4  ;;  %1787 = vmatprep.subr.bf16.mxu1 %v2291_v5  ;;  %v2295_v8 = vld [vmem:[#allocation5 + $0x44] ss:$16 sps:$4 sm:$0xff]   ;;  %v2297_v9 = vld [vmem:[#allocation5 + $0x4c] ss:$16 sps:$4 sm:$0xff]   ;;  %v2299_v10 = vld [vmem:[#allocation5 + $0x40] ss:$16 sps:$4 sm:$0xff]  }
  0x29   :  { %v2300_v11 = vld [vmem:[#allocation5 + $0x48] ss:$16 sps:$4 sm:$0xff]   ;;  %v2301_v12 = vld [vmem:[#allocation5 + $0x64] ss:$16 sps:$4 sm:$0xff]   ;;  %v2303_v13 = vld [vmem:[#allocation5 + $0x6c] ss:$16 sps:$4 sm:$0xff]  }
  0x2a   :  { %v2305_v14 = vld [vmem:[#allocation5 + $0x60] ss:$16 sps:$4 sm:$0xff]   ;;  %v2306_v15 = vld [vmem:[#allocation5 + $0x68] ss:$16 sps:$4 sm:$0xff]   ;;  %v2307_v16 = vld [vmem:[#allocation5 + $0x84] ss:$16 sps:$4 sm:$0xff]  }
  0x2b   :  { %1624 = vmatpush1.bf16.msra.mxu0 %v2293_v6  ;;  %1788 = vmatpush1.bf16.msra.mxu1 %v2294_v7  ;;  %v2309_v17 = vld [vmem:[#allocation5 + $0x8c] ss:$16 sps:$4 sm:$0xff]   ;;  %v2311_v18 = vld [vmem:[#allocation5 + $0x80] ss:$16 sps:$4 sm:$0xff]   ;;  %v2312_v19 = vld [vmem:[#allocation5 + $0x88] ss:$16 sps:$4 sm:$0xff]  }
  0x2c   :  { %1625 = vmatprep.subr.bf16.mxu0 %v2295_v8  ;;  %1789 = vmatprep.subr.bf16.mxu1 %v2297_v9  ;;  %v2313_v20 = vld [vmem:[#allocation5 + $0xa4] ss:$16 sps:$4 sm:$0xff]   ;;  %v2315_v21 = vld [vmem:[#allocation5 + $0xac] ss:$16 sps:$4 sm:$0xff]   ;;  %v2317_v22 = vld [vmem:[#allocation5 + $0xa0] ss:$16 sps:$4 sm:$0xff]  }
  0x2d   :  { %v2318_v23 = vld [vmem:[#allocation5 + $0xa8] ss:$16 sps:$4 sm:$0xff]   ;;  %v2319_v24 = vld [vmem:[#allocation5 + $0xc4] ss:$16 sps:$4 sm:$0xff]   ;;  %v2321_v25 = vld [vmem:[#allocation5 + $0xcc] ss:$16 sps:$4 sm:$0xff]  }
  0x2e   :  { %v2323_v26 = vld [vmem:[#allocation5 + $0xc0] ss:$16 sps:$4 sm:$0xff]   ;;  %v2324_v27 = vld [vmem:[#allocation5 + $0xc8] ss:$16 sps:$4 sm:$0xff]   ;;  %v2325_v28 = vld [vmem:[#allocation5 + $0xe4] ss:$16 sps:$4 sm:$0xff]  }
  0x2f   :  { %1626 = vmatpush1.bf16.msra.mxu0 %v2299_v10  ;;  %1790 = vmatpush1.bf16.msra.mxu1 %v2300_v11  ;;  %v2327_v29 = vld [vmem:[#allocation5 + $0xec] ss:$16 sps:$4 sm:$0xff]   ;;  %v2329_v30 = vld [vmem:[#allocation5 + $0xe0] ss:$16 sps:$4 sm:$0xff]   ;;  %v2330_v31 = vld [vmem:[#allocation5 + $0xe8] ss:$16 sps:$4 sm:$0xff]  }
  0x30   :  { %1627 = vmatprep.subr.bf16.mxu0 %v2301_v12  ;;  %1791 = vmatprep.subr.bf16.mxu1 %v2303_v13  ;;  %v2331_v32 = vld [vmem:[#allocation5 + $0x104] ss:$16 sps:$4 sm:$0xff]   ;;  %v2333_v33 = vld [vmem:[#allocation5 + $0x10c] ss:$16 sps:$4 sm:$0xff]   ;;  %v2335_v34 = vld [vmem:[#allocation5 + $0x100] ss:$16 sps:$4 sm:$0xff]  }
  0x31   :  { %v2336_v35 = vld [vmem:[#allocation5 + $0x108] ss:$16 sps:$4 sm:$0xff]   ;;  %v2337_v36 = vld [vmem:[#allocation5 + $0x124] ss:$16 sps:$4 sm:$0xff]   ;;  %v2339_v37 = vld [vmem:[#allocation5 + $0x12c] ss:$16 sps:$4 sm:$0xff]  }
  0x32   :  { %v2341_v38 = vld [vmem:[#allocation5 + $0x120] ss:$16 sps:$4 sm:$0xff]   ;;  %v2342_v39 = vld [vmem:[#allocation5 + $0x128] ss:$16 sps:$4 sm:$0xff]   ;;  %v2343_v40 = vld [vmem:[#allocation5 + $0x144] ss:$16 sps:$4 sm:$0xff]  }
  0x33   :  { %1628 = vmatpush1.bf16.msra.mxu0 %v2305_v14  ;;  %1792 = vmatpush1.bf16.msra.mxu1 %v2306_v15  ;;  %v2345_v41 = vld [vmem:[#allocation5 + $0x14c] ss:$16 sps:$4 sm:$0xff]   ;;  %v2347_v42 = vld [vmem:[#allocation5 + $0x140] ss:$16 sps:$4 sm:$0xff]   ;;  %v2348_v43 = vld [vmem:[#allocation5 + $0x148] ss:$16 sps:$4 sm:$0xff]  }
  0x34   :  { %1629 = vmatprep.subr.bf16.mxu0 %v2307_v16  ;;  %1793 = vmatprep.subr.bf16.mxu1 %v2309_v17  ;;  %v2349_v44 = vld [vmem:[#allocation5 + $0x164] ss:$16 sps:$4 sm:$0xff]   ;;  %v2351_v45 = vld [vmem:[#allocation5 + $0x16c] ss:$16 sps:$4 sm:$0xff]   ;;  %v2353_v47 = vld [vmem:[#allocation5 + $0x160] ss:$16 sps:$4 sm:$0xff]  }
  0x35   :  { %v48_v46 = vld [vmem:[#allocation3 + $0x8] sm:$0xff]  ;;  %v2355_v50 = vld [vmem:[#allocation5 + $0x184] ss:$16 sps:$4 sm:$0xff]   ;;  %v2359_v52 = vld [vmem:[#allocation5 + $0x180] ss:$16 sps:$4 sm:$0xff]   ;;  %vm1987_vm0 = vcmask 7168  }
  0x36   :  { %v56_v48 = vpack.c.bf16 %v48_v46, %v48_v46  ;;  %v2354_v49 = vld [vmem:[#allocation5 + $0x168] ss:$16 sps:$4 sm:$0xff]   ;;  %v2357_v51 = vld [vmem:[#allocation5 + $0x18c] ss:$16 sps:$4 sm:$0xff]   ;;  %v2361_v54 = vld [vmem:[#allocation5 + $0x1a4] ss:$16 sps:$4 sm:$0xff]  }
  0x37   :  { %1630 = vmatpush1.bf16.msra.mxu0 %v2311_v18  ;;  %1794 = vmatpush1.bf16.msra.mxu1 %v2312_v19  ;;  %v2360_v53 = vld [vmem:[#allocation5 + $0x188] ss:$16 sps:$4 sm:$0xff]   ;;  %v2363_v55 = vld [vmem:[#allocation5 + $0x1ac] ss:$16 sps:$4 sm:$0xff]   ;;  %v2365_v56 = vld [vmem:[#allocation5 + $0x1a0] ss:$16 sps:$4 sm:$0xff]  }
  0x38   :  { %1631 = vmatprep.subr.bf16.mxu0 %v2313_v20  ;;  %1795 = vmatprep.subr.bf16.mxu1 %v2315_v21  ;;  %v2366_v57 = vld [vmem:[#allocation5 + $0x1a8] ss:$16 sps:$4 sm:$0xff]   ;;  %v2367_v58 = vld [vmem:[#allocation5 + $0x1c4] ss:$16 sps:$4 sm:$0xff]   ;;  %v2369_v59 = vld [vmem:[#allocation5 + $0x1cc] ss:$16 sps:$4 sm:$0xff]  }
  0x39   :  { %1653 = vmatprep.mubr.bf16.mxu0 %v56_v48  ;;  %1817 = vmatprep.mubr.bf16.mxu1 %v56_v48  ;;  %v2371_v60 = vld [vmem:[#allocation5 + $0x1c0] ss:$16 sps:$4 sm:$0xff]   ;;  %v2372_v61 = vld [vmem:[#allocation5 + $0x1c8] ss:$16 sps:$4 sm:$0xff]   ;;  %v2373_v62 = vld [vmem:[#allocation5 + $0x1e4] ss:$16 sps:$4 sm:$0xff]  }
  0x3a   :  { %v2375_v63 = vld [vmem:[#allocation5 + $0x1ec] ss:$16 sps:$4 sm:$0xff]   ;;  %v2377_v0 = vld [vmem:[#allocation5 + $0x1e0] ss:$16 sps:$4 sm:$0xff]   ;;  %v2378_v1 = vld [vmem:[#allocation5 + $0x1e8] ss:$16 sps:$4 sm:$0xff]  }
  0x3b   :  { %1632 = vmatpush1.bf16.msra.mxu0 %v2317_v22  ;;  %1796 = vmatpush1.bf16.msra.mxu1 %v2318_v23  ;;  %v47_v2 = vld [vmem:[#allocation3] sm:$0xff]  ;;  %v2384_v4 = vld [vmem:[#allocation5 + $0x20c] ss:$16 sps:$4 sm:$0xff]   ;;  %v2382_v7 = vld [vmem:[#allocation5 + $0x208] ss:$16 sps:$4 sm:$0xff]  }
  0x3c   :  { %1633 = vmatprep.subr.bf16.mxu0 %v2319_v24  ;;  %1797 = vmatprep.subr.bf16.mxu1 %v2321_v25  ;;  %v2381_v3 = vld [vmem:[#allocation5 + $0x204] ss:$16 sps:$4 sm:$0xff]   ;;  %v55_v5 = vpack.c.bf16 %v47_v2, %v47_v2  ;;  %v2379_v6 = vld [vmem:[#allocation5 + $0x200] ss:$16 sps:$4 sm:$0xff]   ;;  %v2390_v9 = vld [vmem:[#allocation5 + $0x22c] ss:$16 sps:$4 sm:$0xff]  }
  0x3d   :  { %v2387_v8 = vld [vmem:[#allocation5 + $0x224] ss:$16 sps:$4 sm:$0xff]   ;;  %v2385_v10 = vld [vmem:[#allocation5 + $0x220] ss:$16 sps:$4 sm:$0xff]   ;;  %v2388_v11 = vld [vmem:[#allocation5 + $0x228] ss:$16 sps:$4 sm:$0xff]  }
  0x3e   :  { %v2393_v12 = vld [vmem:[#allocation5 + $0x244] ss:$16 sps:$4 sm:$0xff]   ;;  %v2396_v13 = vld [vmem:[#allocation5 + $0x24c] ss:$16 sps:$4 sm:$0xff]   ;;  %v2391_v14 = vld [vmem:[#allocation5 + $0x240] ss:$16 sps:$4 sm:$0xff]  }
  0x3f   :  { %1634 = vmatpush1.bf16.msra.mxu0 %v2323_v26  ;;  %1798 = vmatpush1.bf16.msra.mxu1 %v2324_v27  ;;  %v2394_v15 = vld [vmem:[#allocation5 + $0x248] ss:$16 sps:$4 sm:$0xff]   ;;  %v2399_v16 = vld [vmem:[#allocation5 + $0x264] ss:$16 sps:$4 sm:$0xff]   ;;  %v2402_v17 = vld [vmem:[#allocation5 + $0x26c] ss:$16 sps:$4 sm:$0xff]  }
  0x40   :  { %1635 = vmatprep.subr.bf16.mxu0 %v2325_v28  ;;  %1799 = vmatprep.subr.bf16.mxu1 %v2327_v29  ;;  %v2397_v18 = vld [vmem:[#allocation5 + $0x260] ss:$16 sps:$4 sm:$0xff]   ;;  %v2400_v19 = vld [vmem:[#allocation5 + $0x268] ss:$16 sps:$4 sm:$0xff]   ;;  %v2405_v20 = vld [vmem:[#allocation5 + $0x284] ss:$16 sps:$4 sm:$0xff]  }
  0x41   :  { %v2408_v21 = vld [vmem:[#allocation5 + $0x28c] ss:$16 sps:$4 sm:$0xff]   ;;  %v2403_v22 = vld [vmem:[#allocation5 + $0x280] ss:$16 sps:$4 sm:$0xff]   ;;  %v2406_v23 = vld [vmem:[#allocation5 + $0x288] ss:$16 sps:$4 sm:$0xff]  }
  0x42   :  { %v2411_v24 = vld [vmem:[#allocation5 + $0x2a4] ss:$16 sps:$4 sm:$0xff]   ;;  %v2414_v25 = vld [vmem:[#allocation5 + $0x2ac] ss:$16 sps:$4 sm:$0xff]   ;;  %v2409_v26 = vld [vmem:[#allocation5 + $0x2a0] ss:$16 sps:$4 sm:$0xff]  }
  0x43   :  { %1636 = vmatpush1.bf16.msra.mxu0 %v2329_v30  ;;  %1800 = vmatpush1.bf16.msra.mxu1 %v2330_v31  ;;  %v2412_v27 = vld [vmem:[#allocation5 + $0x2a8] ss:$16 sps:$4 sm:$0xff]   ;;  %v2417_v28 = vld [vmem:[#allocation5 + $0x2c4] ss:$16 sps:$4 sm:$0xff]   ;;  %v2420_v29 = vld [vmem:[#allocation5 + $0x2cc] ss:$16 sps:$4 sm:$0xff]  }
  0x44   :  { %1637 = vmatprep.subr.bf16.mxu0 %v2331_v32  ;;  %1801 = vmatprep.subr.bf16.mxu1 %v2333_v33  ;;  %v50_v30 = vld [vmem:[#allocation3 + $0x18] sm:$0xff]  ;;  %v2415_v31 = vld [vmem:[#allocation5 + $0x2c0] ss:$16 sps:$4 sm:$0xff]   ;;  %v2441_v46 = vld [vmem:[#allocation5 + $0x344] ss:$16 sps:$4 sm:$0xff]  }
  0x45   :  { %v58_v32 = vpack.c.bf16 %v50_v30, %v50_v30  ;;  %v2418_v33 = vld [vmem:[#allocation5 + $0x2c8] ss:$16 sps:$4 sm:$0xff]   ;;  %v2439_v48 = vld [vmem:[#allocation5 + $0x340] ss:$16 sps:$4 sm:$0xff]   ;;  %v2471_v2 = vld [vmem:[#allocation5 + $0x3e4] ss:$16 sps:$4 sm:$0xff]  }
  0x46   :  { %v2507_v30 = vld [vmem:[#allocation5 + $0x4a4] ss:$16 sps:$4 sm:$0xff]  }
  0x47   :  { %1638 = vmatpush1.bf16.msra.mxu0 %v2335_v34  ;;  %1802 = vmatpush1.bf16.msra.mxu1 %v2336_v35  ;;  %v2423_v34 = vld [vmem:[#allocation5 + $0x2e4] ss:$16 sps:$4 sm:$0xff]   ;;  %v2426_v35 = vld [vmem:[#allocation5 + $0x2ec] ss:$16 sps:$4 sm:$0xff]  }
  0x48   :  { %1639 = vmatprep.subr.bf16.mxu0 %v2337_v36  ;;  %1803 = vmatprep.subr.bf16.mxu1 %v2339_v37  ;;  %v2421_v36 = vld [vmem:[#allocation5 + $0x2e0] ss:$16 sps:$4 sm:$0xff]   ;;  %v2424_v37 = vld [vmem:[#allocation5 + $0x2e8] ss:$16 sps:$4 sm:$0xff]  }
  0x4b   :  { %1640 = vmatpush1.bf16.msra.mxu0 %v2341_v38  ;;  %1804 = vmatpush1.bf16.msra.mxu1 %v2342_v39  ;;  %v2429_v38 = vld [vmem:[#allocation5 + $0x304] ss:$16 sps:$4 sm:$0xff]   ;;  %v2432_v39 = vld [vmem:[#allocation5 + $0x30c] ss:$16 sps:$4 sm:$0xff]  }
  0x4c   :  { %1641 = vmatprep.subr.bf16.mxu0 %v2343_v40  ;;  %1805 = vmatprep.subr.bf16.mxu1 %v2345_v41  ;;  %v2427_v40 = vld [vmem:[#allocation5 + $0x300] ss:$16 sps:$4 sm:$0xff]   ;;  %v2430_v41 = vld [vmem:[#allocation5 + $0x308] ss:$16 sps:$4 sm:$0xff]  }
  0x4f   :  { %1642 = vmatpush1.bf16.msra.mxu0 %v2347_v42  ;;  %1806 = vmatpush1.bf16.msra.mxu1 %v2348_v43  ;;  %v2435_v42 = vld [vmem:[#allocation5 + $0x324] ss:$16 sps:$4 sm:$0xff]   ;;  %v2438_v43 = vld [vmem:[#allocation5 + $0x32c] ss:$16 sps:$4 sm:$0xff]  }
  0x50   :  { %1643 = vmatprep.subr.bf16.mxu0 %v2349_v44  ;;  %1807 = vmatprep.subr.bf16.mxu1 %v2351_v45  ;;  %v2433_v44 = vld [vmem:[#allocation5 + $0x320] ss:$16 sps:$4 sm:$0xff]   ;;  %v2436_v45 = vld [vmem:[#allocation5 + $0x328] ss:$16 sps:$4 sm:$0xff]  }
  0x53   :  { %1644 = vmatpush1.bf16.msra.mxu0 %v2353_v47  ;;  %1808 = vmatpush1.bf16.msra.mxu1 %v2354_v49  ;;  %v2444_v47 = vld [vmem:[#allocation5 + $0x34c] ss:$16 sps:$4 sm:$0xff]   ;;  %v2442_v49 = vld [vmem:[#allocation5 + $0x348] ss:$16 sps:$4 sm:$0xff]  }
  0x54   :  { %1645 = vmatprep.subr.bf16.mxu0 %v2355_v50  ;;  %1809 = vmatprep.subr.bf16.mxu1 %v2357_v51  ;;  %v2447_v50 = vld [vmem:[#allocation5 + $0x364] ss:$16 sps:$4 sm:$0xff]   ;;  %v2450_v51 = vld [vmem:[#allocation5 + $0x36c] ss:$16 sps:$4 sm:$0xff]  }
  0x57   :  { %1646 = vmatpush1.bf16.msra.mxu0 %v2359_v52  ;;  %1810 = vmatpush1.bf16.msra.mxu1 %v2360_v53  ;;  %v2445_v52 = vld [vmem:[#allocation5 + $0x360] ss:$16 sps:$4 sm:$0xff]   ;;  %v2448_v53 = vld [vmem:[#allocation5 + $0x368] ss:$16 sps:$4 sm:$0xff]  }
  0x58   :  { %1647 = vmatprep.subr.bf16.mxu0 %v2361_v54  ;;  %1811 = vmatprep.subr.bf16.mxu1 %v2363_v55  ;;  %v2453_v54 = vld [vmem:[#allocation5 + $0x384] ss:$16 sps:$4 sm:$0xff]   ;;  %v2456_v55 = vld [vmem:[#allocation5 + $0x38c] ss:$16 sps:$4 sm:$0xff]  }
  0x5b   :  { %1648 = vmatpush1.bf16.msra.mxu0 %v2365_v56  ;;  %1812 = vmatpush1.bf16.msra.mxu1 %v2366_v57  ;;  %v2451_v56 = vld [vmem:[#allocation5 + $0x380] ss:$16 sps:$4 sm:$0xff]   ;;  %v2454_v57 = vld [vmem:[#allocation5 + $0x388] ss:$16 sps:$4 sm:$0xff]  }
  0x5c   :  { %1649 = vmatprep.subr.bf16.mxu0 %v2367_v58  ;;  %1813 = vmatprep.subr.bf16.mxu1 %v2369_v59  ;;  %v2459_v58 = vld [vmem:[#allocation5 + $0x3a4] ss:$16 sps:$4 sm:$0xff]   ;;  %v2462_v59 = vld [vmem:[#allocation5 + $0x3ac] ss:$16 sps:$4 sm:$0xff]  }
  0x5f   :  { %1650 = vmatpush1.bf16.msra.mxu0 %v2371_v60  ;;  %1814 = vmatpush1.bf16.msra.mxu1 %v2372_v61  ;;  %v2457_v60 = vld [vmem:[#allocation5 + $0x3a0] ss:$16 sps:$4 sm:$0xff]   ;;  %v2460_v61 = vld [vmem:[#allocation5 + $0x3a8] ss:$16 sps:$4 sm:$0xff]  }
  0x60   :  { %1651 = vmatprep.subr.bf16.mxu0 %v2373_v62  ;;  %1815 = vmatprep.subr.bf16.mxu1 %v2375_v63  ;;  %v2465_v62 = vld [vmem:[#allocation5 + $0x3c4] ss:$16 sps:$4 sm:$0xff]   ;;  %v2468_v63 = vld [vmem:[#allocation5 + $0x3cc] ss:$16 sps:$4 sm:$0xff]  }
  0x63   :  { %1652 = vmatpush1.bf16.msra.mxu0 %v2377_v0  ;;  %1816 = vmatpush1.bf16.msra.mxu1 %v2378_v1  ;;  %v2463_v0 = vld [vmem:[#allocation5 + $0x3c0] ss:$16 sps:$4 sm:$0xff]   ;;  %v2466_v1 = vld [vmem:[#allocation5 + $0x3c8] ss:$16 sps:$4 sm:$0xff]  }
  0x64   :  { %1662 = vmatprep.subr.bf16.mxu0 %v2381_v3  ;;  %1826 = vmatprep.subr.bf16.mxu1 %v2384_v4  ;;  %v2474_v3 = vld [vmem:[#allocation5 + $0x3ec] ss:$16 sps:$4 sm:$0xff]   ;;  %v2469_v4 = vld [vmem:[#allocation5 + $0x3e0] ss:$16 sps:$4 sm:$0xff]  }
  0x66   :  { %1654 = vmatmul.mubr.bf16.vlgmr.msra.gmra.mrb[0].mxu0 %v55_v5  ;;  %1818 = vmatmul.mubr.bf16.vlgmr.msra.gmra.mrb[0].mxu1 %v55_v5  ;;  %v2472_v5 = vld [vmem:[#allocation5 + $0x3e8] ss:$16 sps:$4 sm:$0xff]  }
  0x67   :  { %1663 = vmatpush1.bf16.msra.mxu0 %v2379_v6  ;;  %1827 = vmatpush1.bf16.msra.mxu1 %v2382_v7  ;;  %v2477_v6 = vld [vmem:[#allocation5 + $0x404] ss:$16 sps:$4 sm:$0xff]  }
  0x68   :  { %1664 = vmatprep.subr.bf16.mxu0 %v2387_v8  ;;  %1828 = vmatprep.subr.bf16.mxu1 %v2390_v9  ;;  %v49_v7 = vld [vmem:[#allocation3 + $0x10] sm:$0xff]  ;;  %v2480_v8 = vld [vmem:[#allocation5 + $0x40c] ss:$16 sps:$4 sm:$0xff]  }
  0x69   :  { %1694 = vmatprep.mubr.bf16.mxu0 %v58_v32  ;;  %1858 = vmatprep.mubr.bf16.mxu1 %v58_v32  ;;  %v2475_v9 = vld [vmem:[#allocation5 + $0x400] ss:$16 sps:$4 sm:$0xff]  }
  0x6a   :  { %v2505_v32 = vld [vmem:[#allocation5 + $0x4a0] ss:$16 sps:$4 sm:$0xff]  }
  0x6b   :  { %1665 = vmatpush1.bf16.msra.mxu0 %v2385_v10  ;;  %1829 = vmatpush1.bf16.msra.mxu1 %v2388_v11  ;;  %v2478_v10 = vld [vmem:[#allocation5 + $0x408] ss:$16 sps:$4 sm:$0xff]   ;;  %v57_v11 = vpack.c.bf16 %v49_v7, %v49_v7  ;;  %v2570_v7 = vld [vmem:[#allocation5 + $0x5ec] ss:$16 sps:$4 sm:$0xff]  }
  0x6c   :  { %1666 = vmatprep.subr.bf16.mxu0 %v2393_v12  ;;  %1830 = vmatprep.subr.bf16.mxu1 %v2396_v13  ;;  %v2483_v12 = vld [vmem:[#allocation5 + $0x424] ss:$16 sps:$4 sm:$0xff]   ;;  %v2486_v13 = vld [vmem:[#allocation5 + $0x42c] ss:$16 sps:$4 sm:$0xff]  }
  0x6f   :  { %1667 = vmatpush1.bf16.msra.mxu0 %v2391_v14  ;;  %1831 = vmatpush1.bf16.msra.mxu1 %v2394_v15  ;;  %v52_v14 = vld [vmem:[#allocation3 + $0x28] sm:$0xff] }
  0x70   :  { %1668 = vmatprep.subr.bf16.mxu0 %v2399_v16  ;;  %1832 = vmatprep.subr.bf16.mxu1 %v2402_v17  ;;  %v60_v15 = vpack.c.bf16 %v52_v14, %v52_v14  ;;  %v2481_v16 = vld [vmem:[#allocation5 + $0x420] ss:$16 sps:$4 sm:$0xff]   ;;  %v2484_v17 = vld [vmem:[#allocation5 + $0x428] ss:$16 sps:$4 sm:$0xff]  }
  0x71   :  { %v54_v14 = vld [vmem:[#allocation3 + $0x38] sm:$0xff] }
  0x73   :  { %1669 = vmatpush1.bf16.msra.mxu0 %v2397_v18  ;;  %1833 = vmatpush1.bf16.msra.mxu1 %v2400_v19  ;;  %v2489_v18 = vld [vmem:[#allocation5 + $0x444] ss:$16 sps:$4 sm:$0xff]   ;;  %v2492_v19 = vld [vmem:[#allocation5 + $0x44c] ss:$16 sps:$4 sm:$0xff]  }
  0x74   :  { %1670 = vmatprep.subr.bf16.mxu0 %v2405_v20  ;;  %1834 = vmatprep.subr.bf16.mxu1 %v2408_v21  ;;  %v2487_v20 = vld [vmem:[#allocation5 + $0x440] ss:$16 sps:$4 sm:$0xff]   ;;  %v2490_v21 = vld [vmem:[#allocation5 + $0x448] ss:$16 sps:$4 sm:$0xff]  }
  0x77   :  { %1671 = vmatpush1.bf16.msra.mxu0 %v2403_v22  ;;  %1835 = vmatpush1.bf16.msra.mxu1 %v2406_v23  ;;  %v2495_v22 = vld [vmem:[#allocation5 + $0x464] ss:$16 sps:$4 sm:$0xff]   ;;  %v2498_v23 = vld [vmem:[#allocation5 + $0x46c] ss:$16 sps:$4 sm:$0xff]  }
  0x78   :  { %1672 = vmatprep.subr.bf16.mxu0 %v2411_v24  ;;  %1836 = vmatprep.subr.bf16.mxu1 %v2414_v25  ;;  %v2493_v24 = vld [vmem:[#allocation5 + $0x460] ss:$16 sps:$4 sm:$0xff]   ;;  %v2496_v25 = vld [vmem:[#allocation5 + $0x468] ss:$16 sps:$4 sm:$0xff]  }
  0x7b   :  { %1673 = vmatpush1.bf16.msra.mxu0 %v2409_v26  ;;  %1837 = vmatpush1.bf16.msra.mxu1 %v2412_v27  ;;  %v2501_v26 = vld [vmem:[#allocation5 + $0x484] ss:$16 sps:$4 sm:$0xff]   ;;  %v2504_v27 = vld [vmem:[#allocation5 + $0x48c] ss:$16 sps:$4 sm:$0xff]  }
  0x7c   :  { %1674 = vmatprep.subr.bf16.mxu0 %v2417_v28  ;;  %1838 = vmatprep.subr.bf16.mxu1 %v2420_v29  ;;  %v2499_v28 = vld [vmem:[#allocation5 + $0x480] ss:$16 sps:$4 sm:$0xff]   ;;  %v2502_v29 = vld [vmem:[#allocation5 + $0x488] ss:$16 sps:$4 sm:$0xff]  }
  0x7f   :  { %1675 = vmatpush1.bf16.msra.mxu0 %v2415_v31  ;;  %1839 = vmatpush1.bf16.msra.mxu1 %v2418_v33  ;;  %v2510_v31 = vld [vmem:[#allocation5 + $0x4ac] ss:$16 sps:$4 sm:$0xff]   ;;  %v2508_v33 = vld [vmem:[#allocation5 + $0x4a8] ss:$16 sps:$4 sm:$0xff]  }
  0x80   :  { %1676 = vmatprep.subr.bf16.mxu0 %v2423_v34  ;;  %1840 = vmatprep.subr.bf16.mxu1 %v2426_v35  ;;  %v2513_v34 = vld [vmem:[#allocation5 + $0x4c4] ss:$16 sps:$4 sm:$0xff]   ;;  %v2516_v35 = vld [vmem:[#allocation5 + $0x4cc] ss:$16 sps:$4 sm:$0xff]  }
  0x83   :  { %1677 = vmatpush1.bf16.msra.mxu0 %v2421_v36  ;;  %1841 = vmatpush1.bf16.msra.mxu1 %v2424_v37  ;;  %v2511_v36 = vld [vmem:[#allocation5 + $0x4c0] ss:$16 sps:$4 sm:$0xff]   ;;  %v2514_v37 = vld [vmem:[#allocation5 + $0x4c8] ss:$16 sps:$4 sm:$0xff]  }
  0x84   :  { %1678 = vmatprep.subr.bf16.mxu0 %v2429_v38  ;;  %1842 = vmatprep.subr.bf16.mxu1 %v2432_v39  ;;  %v2519_v38 = vld [vmem:[#allocation5 + $0x4e4] ss:$16 sps:$4 sm:$0xff]   ;;  %v2522_v39 = vld [vmem:[#allocation5 + $0x4ec] ss:$16 sps:$4 sm:$0xff]  }
  0x87   :  { %1679 = vmatpush1.bf16.msra.mxu0 %v2427_v40  ;;  %1843 = vmatpush1.bf16.msra.mxu1 %v2430_v41  ;;  %v2517_v40 = vld [vmem:[#allocation5 + $0x4e0] ss:$16 sps:$4 sm:$0xff]   ;;  %v2520_v41 = vld [vmem:[#allocation5 + $0x4e8] ss:$16 sps:$4 sm:$0xff]  }
  0x88   :  { %1680 = vmatprep.subr.bf16.mxu0 %v2435_v42  ;;  %1844 = vmatprep.subr.bf16.mxu1 %v2438_v43  ;;  %v2525_v42 = vld [vmem:[#allocation5 + $0x504] ss:$16 sps:$4 sm:$0xff]   ;;  %v2528_v43 = vld [vmem:[#allocation5 + $0x50c] ss:$16 sps:$4 sm:$0xff]  }
  0x8b   :  { %1681 = vmatpush1.bf16.msra.mxu0 %v2433_v44  ;;  %1845 = vmatpush1.bf16.msra.mxu1 %v2436_v45  ;;  %v2523_v44 = vld [vmem:[#allocation5 + $0x500] ss:$16 sps:$4 sm:$0xff]   ;;  %v2526_v45 = vld [vmem:[#allocation5 + $0x508] ss:$16 sps:$4 sm:$0xff]  }
  0x8c   :  { %1682 = vmatprep.subr.bf16.mxu0 %v2441_v46  ;;  %1846 = vmatprep.subr.bf16.mxu1 %v2444_v47  ;;  %v2531_v46 = vld [vmem:[#allocation5 + $0x524] ss:$16 sps:$4 sm:$0xff]   ;;  %v2534_v47 = vld [vmem:[#allocation5 + $0x52c] ss:$16 sps:$4 sm:$0xff]  }
  0x8f   :  { %1683 = vmatpush1.bf16.msra.mxu0 %v2439_v48  ;;  %1847 = vmatpush1.bf16.msra.mxu1 %v2442_v49  ;;  %v2529_v48 = vld [vmem:[#allocation5 + $0x520] ss:$16 sps:$4 sm:$0xff]   ;;  %v2532_v49 = vld [vmem:[#allocation5 + $0x528] ss:$16 sps:$4 sm:$0xff]  }
  0x90   :  { %1684 = vmatprep.subr.bf16.mxu0 %v2447_v50  ;;  %1848 = vmatprep.subr.bf16.mxu1 %v2450_v51  ;;  %v2537_v50 = vld [vmem:[#allocation5 + $0x544] ss:$16 sps:$4 sm:$0xff]   ;;  %v2540_v51 = vld [vmem:[#allocation5 + $0x54c] ss:$16 sps:$4 sm:$0xff]  }
  0x93   :  { %1685 = vmatpush1.bf16.msra.mxu0 %v2445_v52  ;;  %1849 = vmatpush1.bf16.msra.mxu1 %v2448_v53  ;;  %v2535_v52 = vld [vmem:[#allocation5 + $0x540] ss:$16 sps:$4 sm:$0xff]   ;;  %v2538_v53 = vld [vmem:[#allocation5 + $0x548] ss:$16 sps:$4 sm:$0xff]  }
  0x94   :  { %1686 = vmatprep.subr.bf16.mxu0 %v2453_v54  ;;  %1850 = vmatprep.subr.bf16.mxu1 %v2456_v55  ;;  %v2543_v54 = vld [vmem:[#allocation5 + $0x564] ss:$16 sps:$4 sm:$0xff]   ;;  %v2546_v55 = vld [vmem:[#allocation5 + $0x56c] ss:$16 sps:$4 sm:$0xff]  }
  0x97   :  { %1687 = vmatpush1.bf16.msra.mxu0 %v2451_v56  ;;  %1851 = vmatpush1.bf16.msra.mxu1 %v2454_v57  ;;  %v2541_v56 = vld [vmem:[#allocation5 + $0x560] ss:$16 sps:$4 sm:$0xff]   ;;  %v2544_v57 = vld [vmem:[#allocation5 + $0x568] ss:$16 sps:$4 sm:$0xff]  }
  0x98   :  { %1688 = vmatprep.subr.bf16.mxu0 %v2459_v58  ;;  %1852 = vmatprep.subr.bf16.mxu1 %v2462_v59  ;;  %v2549_v58 = vld [vmem:[#allocation5 + $0x584] ss:$16 sps:$4 sm:$0xff]   ;;  %v2552_v59 = vld [vmem:[#allocation5 + $0x58c] ss:$16 sps:$4 sm:$0xff]  }
  0x9b   :  { %1689 = vmatpush1.bf16.msra.mxu0 %v2457_v60  ;;  %1853 = vmatpush1.bf16.msra.mxu1 %v2460_v61  ;;  %v2547_v60 = vld [vmem:[#allocation5 + $0x580] ss:$16 sps:$4 sm:$0xff]   ;;  %v2550_v61 = vld [vmem:[#allocation5 + $0x588] ss:$16 sps:$4 sm:$0xff]  }
  0x9c   :  { %1690 = vmatprep.subr.bf16.mxu0 %v2465_v62  ;;  %1854 = vmatprep.subr.bf16.mxu1 %v2468_v63  ;;  %v2555_v62 = vld [vmem:[#allocation5 + $0x5a4] ss:$16 sps:$4 sm:$0xff]   ;;  %v2558_v63 = vld [vmem:[#allocation5 + $0x5ac] ss:$16 sps:$4 sm:$0xff]  }
  0x9f   :  { %1691 = vmatpush1.bf16.msra.mxu0 %v2463_v0  ;;  %1855 = vmatpush1.bf16.msra.mxu1 %v2466_v1  ;;  %v2553_v0 = vld [vmem:[#allocation5 + $0x5a0] ss:$16 sps:$4 sm:$0xff]   ;;  %v2556_v1 = vld [vmem:[#allocation5 + $0x5a8] ss:$16 sps:$4 sm:$0xff]  }
  0xa0   :  { %1692 = vmatprep.subr.bf16.mxu0 %v2471_v2  ;;  %1856 = vmatprep.subr.bf16.mxu1 %v2474_v3  ;;  %v2561_v2 = vld [vmem:[#allocation5 + $0x5c4] ss:$16 sps:$4 sm:$0xff]   ;;  %v2564_v3 = vld [vmem:[#allocation5 + $0x5cc] ss:$16 sps:$4 sm:$0xff]  }
  0xa3   :  { %1693 = vmatpush1.bf16.msra.mxu0 %v2469_v4  ;;  %1857 = vmatpush1.bf16.msra.mxu1 %v2472_v5  ;;  %v2559_v4 = vld [vmem:[#allocation5 + $0x5c0] ss:$16 sps:$4 sm:$0xff]   ;;  %v2562_v5 = vld [vmem:[#allocation5 + $0x5c8] ss:$16 sps:$4 sm:$0xff]  }
  0xa4   :  { %1703 = vmatprep.subr.bf16.mxu0 %v2477_v6  ;;  %1867 = vmatprep.subr.bf16.mxu1 %v2480_v8  ;;  %v2567_v6 = vld [vmem:[#allocation5 + $0x5e4] ss:$16 sps:$4 sm:$0xff]   ;;  %v2565_v8 = vld [vmem:[#allocation5 + $0x5e0] ss:$16 sps:$4 sm:$0xff]  }
  0xa6   :  { %1695 = vmatmul.mubr.bf16.vlgmr.msra.gmra.mrb[0].mxu0 %v57_v11  ;;  %1859 = vmatmul.mubr.bf16.vlgmr.msra.gmra.mrb[0].mxu1 %v57_v11  ;;  %v2573_v11 = vld [vmem:[#allocation5 + $0x604] ss:$16 sps:$4 sm:$0xff]  }
  0xa7   :  { %1704 = vmatpush1.bf16.msra.mxu0 %v2475_v9  ;;  %1868 = vmatpush1.bf16.msra.mxu1 %v2478_v10  ;;  %v2568_v9 = vld [vmem:[#allocation5 + $0x5e8] ss:$16 sps:$4 sm:$0xff]   ;;  %v51_v10 = vld [vmem:[#allocation3 + $0x20] sm:$0xff] }
  0xa8   :  { %1705 = vmatprep.subr.bf16.mxu0 %v2483_v12  ;;  %1869 = vmatprep.subr.bf16.mxu1 %v2486_v13  ;;  %v2576_v12 = vld [vmem:[#allocation5 + $0x60c] ss:$16 sps:$4 sm:$0xff]   ;;  %v59_v13 = vpack.c.bf16 %v51_v10, %v51_v10  ;;  %v2663_v10 = vld [vmem:[#allocation5 + $0x7e4] ss:$16 sps:$4 sm:$0xff]  }
  0xa9   :  { %1735 = vmatprep.mubr.bf16.mxu0 %v60_v15  ;;  %1899 = vmatprep.mubr.bf16.mxu1 %v60_v15  ;;  %v2571_v15 = vld [vmem:[#allocation5 + $0x600] ss:$16 sps:$4 sm:$0xff]  }
  0xab   :  { %1706 = vmatpush1.bf16.msra.mxu0 %v2481_v16  ;;  %1870 = vmatpush1.bf16.msra.mxu1 %v2484_v17  ;;  %v2574_v16 = vld [vmem:[#allocation5 + $0x608] ss:$16 sps:$4 sm:$0xff]   ;;  %v2579_v17 = vld [vmem:[#allocation5 + $0x624] ss:$16 sps:$4 sm:$0xff]  }
  0xac   :  { %1707 = vmatprep.subr.bf16.mxu0 %v2489_v18  ;;  %1871 = vmatprep.subr.bf16.mxu1 %v2492_v19  ;;  %v2582_v18 = vld [vmem:[#allocation5 + $0x62c] ss:$16 sps:$4 sm:$0xff]   ;;  %v62_v19 = vpack.c.bf16 %v54_v14, %v54_v14  ;;  %v53_v14 = vld [vmem:[#allocation3 + $0x30] sm:$0xff] }
  0xaf   :  { %1708 = vmatpush1.bf16.msra.mxu0 %v2487_v20  ;;  %1872 = vmatpush1.bf16.msra.mxu1 %v2490_v21  ;;  %v2577_v20 = vld [vmem:[#allocation5 + $0x620] ss:$16 sps:$4 sm:$0xff]   ;;  %v2580_v21 = vld [vmem:[#allocation5 + $0x628] ss:$16 sps:$4 sm:$0xff]  }
  0xb0   :  { %1709 = vmatprep.subr.bf16.mxu0 %v2495_v22  ;;  %1873 = vmatprep.subr.bf16.mxu1 %v2498_v23  ;;  %v2585_v22 = vld [vmem:[#allocation5 + $0x644] ss:$16 sps:$4 sm:$0xff]   ;;  %v2588_v23 = vld [vmem:[#allocation5 + $0x64c] ss:$16 sps:$4 sm:$0xff]  }
  0xb3   :  { %1710 = vmatpush1.bf16.msra.mxu0 %v2493_v24  ;;  %1874 = vmatpush1.bf16.msra.mxu1 %v2496_v25  ;;  %v2583_v24 = vld [vmem:[#allocation5 + $0x640] ss:$16 sps:$4 sm:$0xff]   ;;  %v2586_v25 = vld [vmem:[#allocation5 + $0x648] ss:$16 sps:$4 sm:$0xff]  }
  0xb4   :  { %1711 = vmatprep.subr.bf16.mxu0 %v2501_v26  ;;  %1875 = vmatprep.subr.bf16.mxu1 %v2504_v27  ;;  %v2591_v26 = vld [vmem:[#allocation5 + $0x664] ss:$16 sps:$4 sm:$0xff]   ;;  %v2594_v27 = vld [vmem:[#allocation5 + $0x66c] ss:$16 sps:$4 sm:$0xff]  }
  0xb7   :  { %1712 = vmatpush1.bf16.msra.mxu0 %v2499_v28  ;;  %1876 = vmatpush1.bf16.msra.mxu1 %v2502_v29  ;;  %v2589_v28 = vld [vmem:[#allocation5 + $0x660] ss:$16 sps:$4 sm:$0xff]   ;;  %v2592_v29 = vld [vmem:[#allocation5 + $0x668] ss:$16 sps:$4 sm:$0xff]  }
  0xb8   :  { %1713 = vmatprep.subr.bf16.mxu0 %v2507_v30  ;;  %1877 = vmatprep.subr.bf16.mxu1 %v2510_v31  ;;  %v2597_v30 = vld [vmem:[#allocation5 + $0x684] ss:$16 sps:$4 sm:$0xff]   ;;  %v2600_v31 = vld [vmem:[#allocation5 + $0x68c] ss:$16 sps:$4 sm:$0xff]  }
  0xbb   :  { %1714 = vmatpush1.bf16.msra.mxu0 %v2505_v32  ;;  %1878 = vmatpush1.bf16.msra.mxu1 %v2508_v33  ;;  %v2595_v32 = vld [vmem:[#allocation5 + $0x680] ss:$16 sps:$4 sm:$0xff]   ;;  %v2598_v33 = vld [vmem:[#allocation5 + $0x688] ss:$16 sps:$4 sm:$0xff]  }
  0xbc   :  { %1715 = vmatprep.subr.bf16.mxu0 %v2513_v34  ;;  %1879 = vmatprep.subr.bf16.mxu1 %v2516_v35  ;;  %v2603_v34 = vld [vmem:[#allocation5 + $0x6a4] ss:$16 sps:$4 sm:$0xff]   ;;  %v2606_v35 = vld [vmem:[#allocation5 + $0x6ac] ss:$16 sps:$4 sm:$0xff]  }
  0xbf   :  { %1716 = vmatpush1.bf16.msra.mxu0 %v2511_v36  ;;  %1880 = vmatpush1.bf16.msra.mxu1 %v2514_v37  ;;  %v2601_v36 = vld [vmem:[#allocation5 + $0x6a0] ss:$16 sps:$4 sm:$0xff]   ;;  %v2604_v37 = vld [vmem:[#allocation5 + $0x6a8] ss:$16 sps:$4 sm:$0xff]  }
  0xc0   :  { %1717 = vmatprep.subr.bf16.mxu0 %v2519_v38  ;;  %1881 = vmatprep.subr.bf16.mxu1 %v2522_v39  ;;  %v2609_v38 = vld [vmem:[#allocation5 + $0x6c4] ss:$16 sps:$4 sm:$0xff]   ;;  %v2612_v39 = vld [vmem:[#allocation5 + $0x6cc] ss:$16 sps:$4 sm:$0xff]  }
  0xc3   :  { %1718 = vmatpush1.bf16.msra.mxu0 %v2517_v40  ;;  %1882 = vmatpush1.bf16.msra.mxu1 %v2520_v41  ;;  %v2607_v40 = vld [vmem:[#allocation5 + $0x6c0] ss:$16 sps:$4 sm:$0xff]   ;;  %v2610_v41 = vld [vmem:[#allocation5 + $0x6c8] ss:$16 sps:$4 sm:$0xff]  }
  0xc4   :  { %1719 = vmatprep.subr.bf16.mxu0 %v2525_v42  ;;  %1883 = vmatprep.subr.bf16.mxu1 %v2528_v43  ;;  %v2615_v42 = vld [vmem:[#allocation5 + $0x6e4] ss:$16 sps:$4 sm:$0xff]   ;;  %v2618_v43 = vld [vmem:[#allocation5 + $0x6ec] ss:$16 sps:$4 sm:$0xff]  }
  0xc7   :  { %1720 = vmatpush1.bf16.msra.mxu0 %v2523_v44  ;;  %1884 = vmatpush1.bf16.msra.mxu1 %v2526_v45  ;;  %v2613_v44 = vld [vmem:[#allocation5 + $0x6e0] ss:$16 sps:$4 sm:$0xff]   ;;  %v2616_v45 = vld [vmem:[#allocation5 + $0x6e8] ss:$16 sps:$4 sm:$0xff]  }
  0xc8   :  { %1721 = vmatprep.subr.bf16.mxu0 %v2531_v46  ;;  %1885 = vmatprep.subr.bf16.mxu1 %v2534_v47  ;;  %v2621_v46 = vld [vmem:[#allocation5 + $0x704] ss:$16 sps:$4 sm:$0xff]   ;;  %v2624_v47 = vld [vmem:[#allocation5 + $0x70c] ss:$16 sps:$4 sm:$0xff]  }
  0xcb   :  { %1722 = vmatpush1.bf16.msra.mxu0 %v2529_v48  ;;  %1886 = vmatpush1.bf16.msra.mxu1 %v2532_v49  ;;  %v2619_v48 = vld [vmem:[#allocation5 + $0x700] ss:$16 sps:$4 sm:$0xff]   ;;  %v2622_v49 = vld [vmem:[#allocation5 + $0x708] ss:$16 sps:$4 sm:$0xff]  }
  0xcc   :  { %1723 = vmatprep.subr.bf16.mxu0 %v2537_v50  ;;  %1887 = vmatprep.subr.bf16.mxu1 %v2540_v51  ;;  %v2627_v50 = vld [vmem:[#allocation5 + $0x724] ss:$16 sps:$4 sm:$0xff]   ;;  %v2630_v51 = vld [vmem:[#allocation5 + $0x72c] ss:$16 sps:$4 sm:$0xff]  }
  0xcf   :  { %1724 = vmatpush1.bf16.msra.mxu0 %v2535_v52  ;;  %1888 = vmatpush1.bf16.msra.mxu1 %v2538_v53  ;;  %v2625_v52 = vld [vmem:[#allocation5 + $0x720] ss:$16 sps:$4 sm:$0xff]   ;;  %v2628_v53 = vld [vmem:[#allocation5 + $0x728] ss:$16 sps:$4 sm:$0xff]  }
  0xd0   :  { %1725 = vmatprep.subr.bf16.mxu0 %v2543_v54  ;;  %1889 = vmatprep.subr.bf16.mxu1 %v2546_v55  ;;  %v2633_v54 = vld [vmem:[#allocation5 + $0x744] ss:$16 sps:$4 sm:$0xff]   ;;  %v2636_v55 = vld [vmem:[#allocation5 + $0x74c] ss:$16 sps:$4 sm:$0xff]  }
  0xd3   :  { %1726 = vmatpush1.bf16.msra.mxu0 %v2541_v56  ;;  %1890 = vmatpush1.bf16.msra.mxu1 %v2544_v57  ;;  %v2631_v56 = vld [vmem:[#allocation5 + $0x740] ss:$16 sps:$4 sm:$0xff]   ;;  %v2634_v57 = vld [vmem:[#allocation5 + $0x748] ss:$16 sps:$4 sm:$0xff]  }
  0xd4   :  { %1727 = vmatprep.subr.bf16.mxu0 %v2549_v58  ;;  %1891 = vmatprep.subr.bf16.mxu1 %v2552_v59  ;;  %v2639_v58 = vld [vmem:[#allocation5 + $0x764] ss:$16 sps:$4 sm:$0xff]   ;;  %v2642_v59 = vld [vmem:[#allocation5 + $0x76c] ss:$16 sps:$4 sm:$0xff]  }
  0xd7   :  { %1728 = vmatpush1.bf16.msra.mxu0 %v2547_v60  ;;  %1892 = vmatpush1.bf16.msra.mxu1 %v2550_v61  ;;  %v2637_v60 = vld [vmem:[#allocation5 + $0x760] ss:$16 sps:$4 sm:$0xff]   ;;  %v2640_v61 = vld [vmem:[#allocation5 + $0x768] ss:$16 sps:$4 sm:$0xff]  }
  0xd8   :  { %1729 = vmatprep.subr.bf16.mxu0 %v2555_v62  ;;  %1893 = vmatprep.subr.bf16.mxu1 %v2558_v63  ;;  %v2645_v62 = vld [vmem:[#allocation5 + $0x784] ss:$16 sps:$4 sm:$0xff]   ;;  %v2648_v63 = vld [vmem:[#allocation5 + $0x78c] ss:$16 sps:$4 sm:$0xff]  }
  0xdb   :  { %1730 = vmatpush1.bf16.msra.mxu0 %v2553_v0  ;;  %1894 = vmatpush1.bf16.msra.mxu1 %v2556_v1  ;;  %v2643_v0 = vld [vmem:[#allocation5 + $0x780] ss:$16 sps:$4 sm:$0xff]   ;;  %v2646_v1 = vld [vmem:[#allocation5 + $0x788] ss:$16 sps:$4 sm:$0xff]  }
  0xdc   :  { %1731 = vmatprep.subr.bf16.mxu0 %v2561_v2  ;;  %1895 = vmatprep.subr.bf16.mxu1 %v2564_v3  ;;  %v2651_v2 = vld [vmem:[#allocation5 + $0x7a4] ss:$16 sps:$4 sm:$0xff]   ;;  %v2654_v3 = vld [vmem:[#allocation5 + $0x7ac] ss:$16 sps:$4 sm:$0xff]  }
  0xdf   :  { %1732 = vmatpush1.bf16.msra.mxu0 %v2559_v4  ;;  %1896 = vmatpush1.bf16.msra.mxu1 %v2562_v5  ;;  %v2649_v4 = vld [vmem:[#allocation5 + $0x7a0] ss:$16 sps:$4 sm:$0xff]   ;;  %v2652_v5 = vld [vmem:[#allocation5 + $0x7a8] ss:$16 sps:$4 sm:$0xff]  }
  0xe0   :  { %1733 = vmatprep.subr.bf16.mxu0 %v2567_v6  ;;  %1897 = vmatprep.subr.bf16.mxu1 %v2570_v7  ;;  %v2657_v6 = vld [vmem:[#allocation5 + $0x7c4] ss:$16 sps:$4 sm:$0xff]   ;;  %v2660_v7 = vld [vmem:[#allocation5 + $0x7cc] ss:$16 sps:$4 sm:$0xff]  }
  0xe3   :  { %1734 = vmatpush1.bf16.msra.mxu0 %v2565_v8  ;;  %1898 = vmatpush1.bf16.msra.mxu1 %v2568_v9  ;;  %v2655_v8 = vld [vmem:[#allocation5 + $0x7c0] ss:$16 sps:$4 sm:$0xff]   ;;  %v2658_v9 = vld [vmem:[#allocation5 + $0x7c8] ss:$16 sps:$4 sm:$0xff]  }
  0xe4   :  { %1744 = vmatprep.subr.bf16.mxu0 %v2573_v11  ;;  %1908 = vmatprep.subr.bf16.mxu1 %v2576_v12  ;;  %v2666_v11 = vld [vmem:[#allocation5 + $0x7ec] ss:$16 sps:$4 sm:$0xff]   ;;  %v2661_v12 = vld [vmem:[#allocation5 + $0x7e0] ss:$16 sps:$4 sm:$0xff]  }
  0xe6   :  { %1736 = vmatmul.mubr.bf16.vlgmr.msra.gmra.mrb[0].mxu0 %v59_v13  ;;  %1900 = vmatmul.mubr.bf16.vlgmr.msra.gmra.mrb[0].mxu1 %v59_v13  ;;  %v2664_v13 = vld [vmem:[#allocation5 + $0x7e8] ss:$16 sps:$4 sm:$0xff]  }
  0xe7   :  { %1745 = vmatpush1.bf16.msra.mxu0 %v2571_v15  ;;  %1909 = vmatpush1.bf16.msra.mxu1 %v2574_v16  ;;  %v61_v15 = vpack.c.bf16 %v53_v14, %v53_v14  ;;  %v321_v16 = vlaneseq }
  0xe8   :  { %1746 = vmatprep.subr.bf16.mxu0 %v2579_v17  ;;  %1910 = vmatprep.subr.bf16.mxu1 %v2582_v18 }
  0xe9   :  { %1776 = vmatprep.mubr.bf16.mxu0 %v62_v19  ;;  %1940 = vmatprep.mubr.bf16.mxu1 %v62_v19  ;;  %v322_v17 = vshrl.u32 %v321_v16, 7 }
  0xeb   :  { %1747 = vmatpush1.bf16.msra.mxu0 %v2577_v20  ;;  %1911 = vmatpush1.bf16.msra.mxu1 %v2580_v21  ;;  %v323_v18 = vsub.s32 0, %v322_v17  ;;  %v331_v19 = vsub.s32 2, %v322_v17  ;;  %v319_v20 = vld [vmem:[%s2794_s2] sm:$0xf]  ;;  %v327_v21 = vsub.s32 1, %v322_v17 }
  0xec   :  { %1748 = vmatprep.subr.bf16.mxu0 %v2585_v22  ;;  %1912 = vmatprep.subr.bf16.mxu1 %v2588_v23  ;;  %v335_v22 = vsub.s32 3, %v322_v17 }
  0xed   :  { %v324_v23 = vrot.slane %v319_v20, %v323_v18 }
  0xef   :  { %1749 = vmatpush1.bf16.msra.mxu0 %v2583_v24  ;;  %1913 = vmatpush1.bf16.msra.mxu1 %v2586_v25  ;;  %v332_v24 = vrot.slane %v319_v20, %v331_v19  ;;  %v1953_v25 = vld [vmem:[%s2795_s3] sm:$0xf] }
  0xf0   :  { %1750 = vmatprep.subr.bf16.mxu0 %v2591_v26  ;;  %1914 = vmatprep.subr.bf16.mxu1 %v2594_v27  ;;  %v328_v26 = vrot.slane %v319_v20, %v327_v21  ;;  %v336_v27 = vrot.slane %v319_v20, %v335_v22 }
  0xf3   :  { %1751 = vmatpush1.bf16.msra.mxu0 %v2589_v28  ;;  %1915 = vmatpush1.bf16.msra.mxu1 %v2592_v29 }
  0xf4   :  { %1752 = vmatprep.subr.bf16.mxu0 %v2597_v30  ;;  %1916 = vmatprep.subr.bf16.mxu1 %v2600_v31  ;;  %v1958_v31 = vrot.slane %v1953_v25, %v323_v18 }
  0xf7   :  { %1753 = vmatpush1.bf16.msra.mxu0 %v2595_v32  ;;  %1917 = vmatpush1.bf16.msra.mxu1 %v2598_v33 }
  0xf8   :  { %1754 = vmatprep.subr.bf16.mxu0 %v2603_v34  ;;  %1918 = vmatprep.subr.bf16.mxu1 %v2606_v35 }
  0xfb   :  { %1755 = vmatpush1.bf16.msra.mxu0 %v2601_v36  ;;  %1919 = vmatpush1.bf16.msra.mxu1 %v2604_v37  ;;  %v1962_v36 = vrot.slane %v1953_v25, %v327_v21 }
  0xfc   :  { %1756 = vmatprep.subr.bf16.mxu0 %v2609_v38  ;;  %1920 = vmatprep.subr.bf16.mxu1 %v2612_v39 }
  0xff   :  { %1757 = vmatpush1.bf16.msra.mxu0 %v2607_v40  ;;  %1921 = vmatpush1.bf16.msra.mxu1 %v2610_v41 }
 0x100   :  { %1758 = vmatprep.subr.bf16.mxu0 %v2615_v42  ;;  %1922 = vmatprep.subr.bf16.mxu1 %v2618_v43 }
 0x103   :  { %1759 = vmatpush1.bf16.msra.mxu0 %v2613_v44  ;;  %1923 = vmatpush1.bf16.msra.mxu1 %v2616_v45  ;;  %v1966_v44 = vrot.slane %v1953_v25, %v331_v19 }
 0x104   :  { %1760 = vmatprep.subr.bf16.mxu0 %v2621_v46  ;;  %1924 = vmatprep.subr.bf16.mxu1 %v2624_v47 }
 0x107   :  { %1761 = vmatpush1.bf16.msra.mxu0 %v2619_v48  ;;  %1925 = vmatpush1.bf16.msra.mxu1 %v2622_v49  ;;  %v1970_v49 = vrot.slane %v1953_v25, %v335_v22 }
 0x108   :  { %1762 = vmatprep.subr.bf16.mxu0 %v2627_v50  ;;  %1926 = vmatprep.subr.bf16.mxu1 %v2630_v51 }
 0x10b   :  { %1763 = vmatpush1.bf16.msra.mxu0 %v2625_v52  ;;  %1927 = vmatpush1.bf16.msra.mxu1 %v2628_v53 }
 0x10c   :  { %1764 = vmatprep.subr.bf16.mxu0 %v2633_v54  ;;  %1928 = vmatprep.subr.bf16.mxu1 %v2636_v55  ;;  %v1985_v55 = vstv %s2796_s4 }
 0x10f   :  { %1765 = vmatpush1.bf16.msra.mxu0 %v2631_v56  ;;  %1929 = vmatpush1.bf16.msra.mxu1 %v2634_v57 }
 0x110   :  { %1766 = vmatprep.subr.bf16.mxu0 %v2639_v58  ;;  %1930 = vmatprep.subr.bf16.mxu1 %v2642_v59 }
 0x113   :  { %1767 = vmatpush1.bf16.msra.mxu0 %v2637_v60  ;;  %1931 = vmatpush1.bf16.msra.mxu1 %v2640_v61 }
 0x114   :  { %1768 = vmatprep.subr.bf16.mxu0 %v2645_v62  ;;  %1932 = vmatprep.subr.bf16.mxu1 %v2648_v63 }
 0x117   :  { %1769 = vmatpush1.bf16.msra.mxu0 %v2643_v0  ;;  %1933 = vmatpush1.bf16.msra.mxu1 %v2646_v1 }
 0x118   :  { %1770 = vmatprep.subr.bf16.mxu0 %v2651_v2  ;;  %1934 = vmatprep.subr.bf16.mxu1 %v2654_v3 }
 0x11b   :  { %1771 = vmatpush1.bf16.msra.mxu0 %v2649_v4  ;;  %1935 = vmatpush1.bf16.msra.mxu1 %v2652_v5 }
 0x11c   :  { %1772 = vmatprep.subr.bf16.mxu0 %v2657_v6  ;;  %1936 = vmatprep.subr.bf16.mxu1 %v2660_v7 }
 0x11f   :  { %1773 = vmatpush1.bf16.msra.mxu0 %v2655_v8  ;;  %1937 = vmatpush1.bf16.msra.mxu1 %v2658_v9 }
 0x120   :  { %1774 = vmatprep.subr.bf16.mxu0 %v2663_v10  ;;  %1938 = vmatprep.subr.bf16.mxu1 %v2666_v11 }
 0x123   :  { %1775 = vmatpush1.bf16.msra.mxu0 %v2661_v12  ;;  %1939 = vmatpush1.bf16.msra.mxu1 %v2664_v13 }
 0x126   :  { %1777 = vmatmul.mubr.bf16.vlgmr.msra.gmra.mrb[0].mxu0 %v61_v15  ;;  %1941 = vmatmul.mubr.bf16.vlgmr.msra.gmra.mrb[0].mxu1 %v61_v15 }
 0x1f9   :  { %v1778_v28 = vpop.f32.mrb[0].mxu0  ;;  %v1942_v29 = vpop.f32.mrb[0].mxu1 }
 0x1fa   :  { %v2251_v30 = vadd.f32 %v1778_v28, %v324_v23  ;;  %v2253_v32 = vadd.f32 %v1942_v29, %v332_v24  ;;  %v1780_v33 = vpop.f32.mrb[1].mxu0  ;;  %v1944_v34 = vpop.f32.mrb[1].mxu1 }
 0x1fb   :  { %v2252_v35 = vadd.f32 %v1780_v33, %v328_v26  ;;  %v2254_v37 = vadd.f32 %v1944_v34, %v336_v27  ;;  %v1782_v38 = vpop.f32.mrb[2].mxu0  ;;  %v1946_v39 = vpop.f32.mrb[2].mxu1 }
 0x1fc   :  { %v1949_v40 = vmax.f32 %v2251_v30, 0.0  ;;  %v1783_v41 = vpop.f32.mrb[3].mxu0  ;;  %v1947_v42 = vpop.f32.mrb[3].mxu1  ;;  %v1951_v43 = vmax.f32 %v2253_v32, 0.0 }
 0x1fd   :  { %v1950_v45 = vmax.f32 %v2252_v35, 0.0  ;;  %v1952_v48 = vmax.f32 %v2254_v37, 0.0 }
 0x1fe   :  { %v1975_v46 = vmul.f32 %v1958_v31, %v1949_v40  ;;  %v1977_v50 = vmul.f32 %v1966_v44, %v1951_v43 }
 0x1ff   :  { %v1976_v47 = vmul.f32 %v1962_v36, %v1950_v45  ;;  %v1978_v52 = vmul.f32 %v1970_v49, %v1952_v48 }
 0x201   :  { %v1979_v51 = vadd.f32 %v1976_v47, %v1975_v46 }
 0x203   :  { %v1980_v53 = vadd.f32 %v1979_v51, %v1977_v50 }
 0x205   :  { %v1981_v54 = vadd.f32 %v1980_v53, %v1978_v52 }
 0x207   :  { %1982 = vadd.xlane.f32.xlu0 %v1981_v54 }
 0x294   :  { %v1983_v56 = vpop.xlane.xlu0 %1982 }
 0x295   :  { %v1986_v57 = vadd.f32 %v1985_v55, %v1983_v56 }
 0x297   :  { %1988 = vst.msk [vmem:[%s2797_s5] sm:$0xff] %vm1987_vm0, %v1986_v57 }
 0x298   :  { %1993 = vsyncpa [#allocation4], 1 }
 0x299   :  { %1994 = vsyncpa [#allocation6], 1 }

</bundles_post_ra>
